<compile_context>
chip_gen: v7x
topology: tpu7x:2x2x1
jax: 0.10.0
libtpu: 0.0.40
codegen_flags: <defaults>
</compile_context>

<pallas_src>
import functools

import jax
import jax.numpy as jnp
from jax.experimental import pallas as pl
from jax.experimental.pallas import tpu as pltpu


def _round_up(n: int, m: int) -> int:
    return ((n + m - 1) // m) * m


def _sublane(dtype) -> int:
    # Sublane granularity: 8 rows for 4-byte, 16 for 2-byte, 32 for 1-byte.
    return 8 * (4 // jnp.dtype(dtype).itemsize)


def _actor_kernel(x_ref, w1_ref, w2_ref, w3_ref, b12_ref, b3_ref, o_ref, *,
                  is_cont: bool):
    """Fused 3-layer MLP forward for one batch tile.

    x_ref  : [TM, I]    f32/bf16 (pipelined per grid step)
    w1_ref : [I, Hp]    bf16     (resident, single-buffered)
    w2_ref : [Hp, Hp]   bf16     (resident)
    w3_ref : [Hp, OUT]  bf16     (resident; OUT = out_dim padded to 128 lanes)
    b12_ref: [2, Hp]    f32      (resident; rows = b1, b2; pad lanes = 0)
    b3_ref : [1, OUT]   f32      (resident; pad lanes = -1e30 for discrete head)
    o_ref  : [TM, OUT]  f32/bf16
    """
    # MXU operands in bf16, accumulation + elementwise in f32.
    x = x_ref[...].astype(jnp.bfloat16)

    h1 = jnp.dot(x, w1_ref[...], preferred_element_type=jnp.float32)
    h1 = jnp.maximum(h1 + b12_ref[0:1, :], 0.0)          # pad lanes stay 0

    h2 = jnp.dot(h1.astype(jnp.bfloat16), w2_ref[...],
                 preferred_element_type=jnp.float32)
    h2 = jnp.maximum(h2 + b12_ref[1:2, :], 0.0)          # pad lanes stay 0

    z = jnp.dot(h2.astype(jnp.bfloat16), w3_ref[...],
                preferred_element_type=jnp.float32) + b3_ref[...]

    if is_cont:
        # continuous action head: raw (mu, log_sigma) outputs
        o_ref[...] = z.astype(o_ref.dtype)
    else:
        # numerically stable log_softmax; padded lanes hold ~-1e30 logits so they
        # neither win the max nor contribute to the sum (finite => no NaN).
        z_max = jnp.max(z, axis=-1, keepdims=True)
        shifted = z - z_max
        lse = jnp.log(jnp.sum(jnp.exp(shifted), axis=-1, keepdims=True))
        o_ref[...] = (shifted - lse).astype(o_ref.dtype)


def actor_forward(x, params, *, is_cont: bool = False, block_batch: int = 1024,
                  out_dtype=jnp.float32):
    """Fused ActorNetwork forward via a batch-tiled pallas_call.

    x: [B, input_size] float32 or bfloat16 (bf16 passed through, no extra cast)
    params: dict with w1 [I,H], b1 [H], w2 [H,H], b2 [H], w3 [H,O], b3 [O],
            where O = action_size (discrete) or 2*action_size (continuous).
    out_dtype: jnp.float32 (default) or jnp.bfloat16 (halves output writeback).
    """
    x = jnp.asarray(x)
    if x.dtype != jnp.bfloat16:              # accept bf16 directly; else f32
        x = x.astype(jnp.float32)
    B, I = x.shape
    H = params["w1"].shape[1]
    out_dim = params["w3"].shape[1]

    # ---- lane-dense padding: hidden dim and fc3 output dim -> mult. of 128 ---
    Hp = max(128, _round_up(H, 128))
    OUT = max(128, _round_up(out_dim, 128))
    pad_h = Hp - H
    pad_o = OUT - out_dim
    pad_val = 0.0 if is_cont else -1e30      # keep log_softmax clean on pad lanes

    f32 = jnp.float32
    w1p = jnp.pad(params["w1"].astype(f32), ((0, 0), (0, pad_h)))
    w2p = jnp.pad(params["w2"].astype(f32), ((0, pad_h), (0, pad_h)))
    w3p = jnp.pad(params["w3"].astype(f32), ((0, pad_h), (0, pad_o)))
    b1p = jnp.pad(params["b1"].astype(f32), (0, pad_h))
    b2p = jnp.pad(params["b2"].astype(f32), (0, pad_h))
    b3p = jnp.pad(params["b3"].astype(f32), (0, pad_o),
                  constant_values=pad_val).reshape(1, OUT)

    # ---- bf16 weights (MXU native path), f32 biases ---------------------------
    w1p = w1p.astype(jnp.bfloat16)
    w2p = w2p.astype(jnp.bfloat16)
    w3p = w3p.astype(jnp.bfloat16)
    b12 = jnp.stack([b1p, b2p]).astype(f32)  # [2, Hp] packed -> one small DMA

    # ---- batch tiling ----------------------------------------------------------
    sub = max(_sublane(x.dtype), _sublane(out_dtype))
    block_batch = _round_up(max(int(block_batch), sub), sub)
    # Aim for >=2 grid steps when B allows it, so the "parallel" axis actually
    # feeds both v7x TensorCores; single step for tiny batches.
    half_b = max(sub, _round_up((B + 1) // 2, sub))
    TM = min(block_batch, half_b)
    Bp = _round_up(B, TM)
    if Bp != B:
        x = jnp.pad(x, ((0, Bp - B), (0, 0)))
    grid = (Bp // TM,)

    # ---- explicit VMEM budget (resident single-buffered, x/out double-buffered)
    def _nbytes(a):
        return a.size * a.dtype.itemsize
    resident_bytes = sum(_nbytes(a) for a in (w1p, w2p, w3p, b12, b3p))
    pipelined_bytes = 2 * (TM * I * x.dtype.itemsize
                           + TM * OUT * jnp.dtype(out_dtype).itemsize)
    vmem_limit = min(100 << 20,
                     max(int(1.25 * (resident_bytes + pipelined_bytes)) + (4 << 20),
                         16 << 20))

    kernel = functools.partial(_actor_kernel, is_cont=is_cont)
    # Constant block index + Buffered(1) => fetched once, single VMEM buffer.
    resident = lambda arr: pl.BlockSpec(arr.shape, lambda i: (0, 0),
                                        pipeline_mode=pl.Buffered(1))

    out = pl.pallas_call(
        kernel,
        out_shape=jax.ShapeDtypeStruct((Bp, OUT), out_dtype),
        grid=grid,
        in_specs=[
            pl.BlockSpec((TM, I), lambda i: (i, 0)),   # x: pipelined over batch
            resident(w1p), resident(w2p), resident(w3p),
            resident(b12), resident(b3p),
        ],
        out_specs=pl.BlockSpec((TM, OUT), lambda i: (i, 0)),
        compiler_params=pltpu.CompilerParams(
            dimension_semantics=("parallel",),          # 2x on v7x megacore
            vmem_limit_bytes=vmem_limit),
    )(x, w1p, w2p, w3p, b12, b3p)

    # TODO(synk): for tiny rollout batches, fuse downstream Categorical/Normal
    # sampling into this same pallas_call to amortize fixed launch/DMA overhead.
    return out[:B, :out_dim]


def init_actor_params(key, input_size, hidden_size, action_size, is_cont=False):
    """Deterministic synthetic init (uniform +-1/sqrt(fan_in), like nn.Linear)."""
    out_size = action_size * 2 if is_cont else action_size
    ks = jax.random.split(key, 6)

    def lin(kw, kb, fan_in, fan_out):
        bound = 1.0 / jnp.sqrt(fan_in)
        w = jax.random.uniform(kw, (fan_in, fan_out), jnp.float32, -bound, bound)
        b = jax.random.uniform(kb, (fan_out,), jnp.float32, -bound, bound)
        return w, b

    w1, b1 = lin(ks[0], ks[1], input_size, hidden_size)
    w2, b2 = lin(ks[2], ks[3], hidden_size, hidden_size)
    w3, b3 = lin(ks[4], ks[5], hidden_size, out_size)
    return {"w1": w1, "b1": b1, "w2": w2, "b2": b2, "w3": w3, "b3": b3}


def actor_forward_ref(x, params, *, is_cont: bool = False):
    """Plain-JAX reference using the same bf16-operand / f32-accumulate matmuls.

    NOTE: bf16 MXU operands deviate from the f32 PyTorch ActorNetwork; log-probs
    carry ~1e-3-level quantization error that grows with hidden_size / |x|.
    """
    def mm(a, w):
        return jnp.dot(a.astype(jnp.bfloat16), w.astype(jnp.bfloat16),
                       preferred_element_type=jnp.float32)
    h1 = jax.nn.relu(mm(x, params["w1"]) + params["b1"])
    h2 = jax.nn.relu(mm(h1, params["w2"]) + params["b2"])
    z = mm(h2, params["w3"]) + params["b3"]
    return z if is_cont else jax.nn.log_softmax(z, axis=-1)


if __name__ == "__main__":
    key = jax.random.PRNGKey(0)
    k_x, k_p1, k_p2 = jax.random.split(key, 3)

    batch = 40            # deliberately not a tile multiple -> exercises padding
    input_size = 16
    hidden_size = 32
    action_size = 8

    x = jax.random.normal(k_x, (batch, input_size), jnp.float32)

    # Discrete head (log_softmax); block_batch=20 exercises the round-to-8
    # robustness fix and a multi-step (2-step) grid.
    p_disc = init_actor_params(k_p1, input_size, hidden_size, action_size,
                               is_cont=False)
    out_d = jax.block_until_ready(
        actor_forward(x, p_disc, is_cont=False, block_batch=20))
    ref_d = actor_forward_ref(x, p_disc, is_cont=False)
    assert out_d.shape == (batch, action_size)
    assert jnp.allclose(out_d, ref_d, atol=1e-3, rtol=1e-3), "discrete mismatch"
    assert jnp.allclose(jnp.sum(jnp.exp(out_d), axis=-1), 1.0, atol=1e-3)

    # Continuous head (raw mu / log_sigma); default (large) block size.
    p_cont = init_actor_params(k_p2, input_size, hidden_size, action_size,
                               is_cont=True)
    out_c = jax.block_until_ready(actor_forward(x, p_cont, is_cont=True))
    ref_c = actor_forward_ref(x, p_cont, is_cont=True)
    assert out_c.shape == (batch, 2 * action_size)
    assert jnp.allclose(out_c, ref_c, atol=1e-3, rtol=1e-3), "continuous mismatch"

    # Optional bf16-output path (halves writeback); looser tolerance for bf16.
    out_b = jax.block_until_ready(
        actor_forward(x, p_disc, is_cont=False, out_dtype=jnp.bfloat16))
    assert out_b.dtype == jnp.bfloat16
    assert jnp.allclose(out_b.astype(jnp.float32), ref_d, atol=3e-2, rtol=3e-2)

    print("KERNEL_OK")
</pallas_src>

<mosaic_0001>
module attributes {stable_mosaic.version = 11 : i64} {
  func.func @_actor_kernel(%arg0: i32, %arg1: memref<24x16xf32, #tpu.memory_space<vmem>>, %arg2: memref<16x128xbf16, #tpu.memory_space<vmem>>, %arg3: memref<128x128xbf16, #tpu.memory_space<vmem>>, %arg4: memref<128x128xbf16, #tpu.memory_space<vmem>>, %arg5: memref<2x128xf32, #tpu.memory_space<vmem>>, %arg6: memref<1x128xf32, #tpu.memory_space<vmem>>, %arg7: memref<24x128xf32, #tpu.memory_space<vmem>>) attributes {dimension_semantics = [#tpu.dimension_semantics<parallel>], iteration_bounds = array<i64: 2>, scalar_prefetch = 0 : i64, scratch_operands = 0 : i64, tpu.core_type = #tpu.core_type<tc>, window_params = [{transform_indices = @transform_0, window_bounds = array<i64: 24, 16>}, {pipeline_mode = #tpu.pipeline_mode<synchronous>, transform_indices = @transform_1, window_bounds = array<i64: 16, 128>}, {pipeline_mode = #tpu.pipeline_mode<synchronous>, transform_indices = @transform_2, window_bounds = array<i64: 128, 128>}, {pipeline_mode = #tpu.pipeline_mode<synchronous>, transform_indices = @transform_3, window_bounds = array<i64: 128, 128>}, {pipeline_mode = #tpu.pipeline_mode<synchronous>, transform_indices = @transform_4, window_bounds = array<i64: 2, 128>}, {pipeline_mode = #tpu.pipeline_mode<synchronous>, transform_indices = @transform_5, window_bounds = array<i64: 1, 128>}, {transform_indices = @transform_6, window_bounds = array<i64: 24, 128>}]} {
    %c0 = arith.constant 0 : index
    %c0_0 = arith.constant 0 : index
    %0 = vector.load %arg1[%c0, %c0_0] : memref<24x16xf32, #tpu.memory_space<vmem>>, vector<24x16xf32>
    %1 = arith.truncf %0 : vector<24x16xf32> to vector<24x16xbf16>
    %c0_1 = arith.constant 0 : index
    %c0_2 = arith.constant 0 : index
    %2 = vector.load %arg2[%c0_1, %c0_2] : memref<16x128xbf16, #tpu.memory_space<vmem>>, vector<16x128xbf16>
    %cst = arith.constant dense<0.000000e+00> : vector<24x128xf32>
    %3 = tpu.matmul %1, %2, %cst {dimension_numbers = #tpu.dot_dimension_numbers<[1], [0], [0], [1], [0, 0, 1, 1], [], []>} : vector<24x16xbf16>, vector<16x128xbf16>, vector<24x128xf32> -> vector<24x128xf32>
    %c0_3 = arith.constant 0 : index
    %c0_4 = arith.constant 0 : index
    %4 = vector.load %arg5[%c0_3, %c0_4] : memref<2x128xf32, #tpu.memory_space<vmem>>, vector<1x128xf32>
    %5 = vector.broadcast %4 : vector<1x128xf32> to vector<24x128xf32>
    %6 = arith.addf %3, %5 : vector<24x128xf32>
    %cst_5 = arith.constant 0.000000e+00 : f32
    %7 = vector.broadcast %cst_5 : f32 to vector<24x128xf32>
    %8 = arith.maximumf %6, %7 : vector<24x128xf32>
    %9 = arith.truncf %8 : vector<24x128xf32> to vector<24x128xbf16>
    %c0_6 = arith.constant 0 : index
    %c0_7 = arith.constant 0 : index
    %10 = vector.load %arg3[%c0_6, %c0_7] : memref<128x128xbf16, #tpu.memory_space<vmem>>, vector<128x128xbf16>
    %cst_8 = arith.constant dense<0.000000e+00> : vector<24x128xf32>
    %11 = tpu.matmul %9, %10, %cst_8 {dimension_numbers = #tpu.dot_dimension_numbers<[1], [0], [0], [1], [0, 0, 1, 1], [], []>} : vector<24x128xbf16>, vector<128x128xbf16>, vector<24x128xf32> -> vector<24x128xf32>
    %c1 = arith.constant 1 : index
    %c0_9 = arith.constant 0 : index
    %12 = vector.load %arg5[%c1, %c0_9] : memref<2x128xf32, #tpu.memory_space<vmem>>, vector<1x128xf32>
    %13 = vector.broadcast %12 : vector<1x128xf32> to vector<24x128xf32>
    %14 = arith.addf %11, %13 : vector<24x128xf32>
    %cst_10 = arith.constant 0.000000e+00 : f32
    %15 = vector.broadcast %cst_10 : f32 to vector<24x128xf32>
    %16 = arith.maximumf %14, %15 : vector<24x128xf32>
    %17 = arith.truncf %16 : vector<24x128xf32> to vector<24x128xbf16>
    %c0_11 = arith.constant 0 : index
    %c0_12 = arith.constant 0 : index
    %18 = vector.load %arg4[%c0_11, %c0_12] : memref<128x128xbf16, #tpu.memory_space<vmem>>, vector<128x128xbf16>
    %cst_13 = arith.constant dense<0.000000e+00> : vector<24x128xf32>
    %19 = tpu.matmul %17, %18, %cst_13 {dimension_numbers = #tpu.dot_dimension_numbers<[1], [0], [0], [1], [0, 0, 1, 1], [], []>} : vector<24x128xbf16>, vector<128x128xbf16>, vector<24x128xf32> -> vector<24x128xf32>
    %c0_14 = arith.constant 0 : index
    %c0_15 = arith.constant 0 : index
    %20 = vector.load %arg6[%c0_14, %c0_15] : memref<1x128xf32, #tpu.memory_space<vmem>>, vector<1x128xf32>
    %21 = vector.broadcast %20 : vector<1x128xf32> to vector<24x128xf32>
    %22 = arith.addf %19, %21 : vector<24x128xf32>
    %cst_16 = arith.constant dense<0xFF800000> : vector<24xf32>
    %23 = vector.multi_reduction <maximumf>, %22, %cst_16 [1] : vector<24x128xf32> to vector<24xf32>
    %24 = vector.shape_cast %23 : vector<24xf32> to vector<24x1xf32>
    %25 = vector.broadcast %24 : vector<24x1xf32> to vector<24x128xf32>
    %26 = arith.subf %22, %25 : vector<24x128xf32>
    %27 = math.exp %26 : vector<24x128xf32>
    %cst_17 = arith.constant dense<0.000000e+00> : vector<24xf32>
    %28 = vector.multi_reduction <add>, %27, %cst_17 [1] : vector<24x128xf32> to vector<24xf32>
    %29 = vector.shape_cast %28 : vector<24xf32> to vector<24x1xf32>
    %30 = math.log %29 : vector<24x1xf32>
    %31 = vector.broadcast %30 : vector<24x1xf32> to vector<24x128xf32>
    %32 = arith.subf %26, %31 : vector<24x128xf32>
    %c0_18 = arith.constant 0 : index
    %c0_19 = arith.constant 0 : index
    %33 = vector.load %arg7[%c0_18, %c0_19] : memref<24x128xf32, #tpu.memory_space<vmem>>, vector<24x128xf32>
    tpu.vector_store %arg7[%c0_18, %c0_19], %32 {strides = array<i32>} : memref<24x128xf32, #tpu.memory_space<vmem>>, vector<24x128xf32>,
    return
  }
  func.func @transform_0(%arg0: i32) -> (i32, i32) {
    %c0_i32 = arith.constant 0 : i32
    %c0_i32_0 = arith.constant 0 : i32
    return %arg0, %c0_i32 : i32, i32
  }
  func.func @transform_1(%arg0: i32) -> (i32, i32) {
    %c0_i32 = arith.constant 0 : i32
    %c0_i32_0 = arith.constant 0 : i32
    %c0_i32_1 = arith.constant 0 : i32
    return %c0_i32, %c0_i32_0 : i32, i32
  }
  func.func @transform_2(%arg0: i32) -> (i32, i32) {
    %c0_i32 = arith.constant 0 : i32
    %c0_i32_0 = arith.constant 0 : i32
    %c0_i32_1 = arith.constant 0 : i32
    return %c0_i32, %c0_i32_0 : i32, i32
  }
  func.func @transform_3(%arg0: i32) -> (i32, i32) {
    %c0_i32 = arith.constant 0 : i32
    %c0_i32_0 = arith.constant 0 : i32
    %c0_i32_1 = arith.constant 0 : i32
    return %c0_i32, %c0_i32_0 : i32, i32
  }
  func.func @transform_4(%arg0: i32) -> (i32, i32) {
    %c0_i32 = arith.constant 0 : i32
    %c0_i32_0 = arith.constant 0 : i32
    %c0_i32_1 = arith.constant 0 : i32
    return %c0_i32, %c0_i32_0 : i32, i32
  }
  func.func @transform_5(%arg0: i32) -> (i32, i32) {
    %c0_i32 = arith.constant 0 : i32
    %c0_i32_0 = arith.constant 0 : i32
    %c0_i32_1 = arith.constant 0 : i32
    return %c0_i32, %c0_i32_0 : i32, i32
  }
  func.func @transform_6(%arg0: i32) -> (i32, i32) {
    %c0_i32 = arith.constant 0 : i32
    %c0_i32_0 = arith.constant 0 : i32
    return %arg0, %c0_i32 : i32, i32
  }
}

</mosaic_0001>

<bundles_post_ra>
// kernel: tpu_custom_call.1
= control target key start
LH: loop header
LB: loop body
LE: loop exit
PB: predicated region body
PF: predicated region fallthrough
CT: control target
= control target key end

     0   :  { %11 = vsyncpa [#allocation3], 0  ;;  %s1309_s0 = inlined_call_operand.vmem [shape: f32[48,16], index: 0, kind: input, shape index: {}]   ;;  %s1310_s1 = inlined_call_operand.hbm [shape: bf16[16,128], index: 1, kind: input, shape index: {}]   ;;  %s1311_s2 = inlined_call_operand.vmem [shape: bf16[128,128], index: 2, kind: input, shape index: {}]   ;;  %s1312_s3 = inlined_call_operand.hbm [shape: bf16[128,128], index: 3, kind: input, shape index: {}]   ;;  %s1313_s4 = inlined_call_operand.vmem [shape: f32[2,128], index: 4, kind: input, shape index: {}]   ;;  %s1314_s5 = inlined_call_operand.vmem [shape: f32[1,128], index: 5, kind: input, shape index: {}]   ;;  %s1315_s6 = inlined_call_operand.hbm [shape: f32[48,128], index: 6, kind: output, shape index: {}]  }
   0x1   :  { %12 = vsyncpa [#allocation6], 0 }
   0x2   :  { %13 = vsyncpa [#allocation4], 0 }
   0x3   :  { %15 = vsyncpa [#allocation4 + $0x1], 0  ;;  %s1102_s21 = smov 0   ;;  %s1104_s22 = smov 0  }
   0x4   :  { %s1106_s23 = smov 0   ;;  %s1108_s24 = smov 0  }
   0x5 LB: > { %s1123_s25 = sadd.s32 4294967295, %s1058_s24   ;;  %s734_s26 = sadd.s32 4294967294, %s1058_s24   ;;  %s1058_s24 = sphi %s1108_s24, %s1333_s24   ;;  %s1054_s23 = sphi %s1106_s23, %s1332_s23   ;;  %s1050_s22 = sphi %s1104_s22, %s1331_s22   ;;  %s1046_s21 = sphi %s1102_s21, %s1330_s21  }
   0x6   : > { %s1127_s27 = sadd.s32 1, %s1058_s24   ;;  %s159_s28 = sadd.s32 1, %s1054_s23 }
   0x7   : > { %s156_s29 = ssub.s32 %s1058_s24, %s1127_s27  ;;  %p169_p0 = scmp.ne.s32.totalorder %s1054_s23, %s1050_s22 }
   0x8   : > { %p157_p1 = scmp.eq.s32.totalorder %s156_s29, 0  ;;  %p170_p2 = scmp.eq.s32.totalorder %s1123_s25, 1 }
   0x9   : > { %p175_p3 = scmp.ne.s32.totalorder %s1050_s22, %s1046_s21  ;;  %p176_p4 = scmp.eq.s32.totalorder %s734_s26, 1 }
   0xa   : > { %s1138_s30 = scalar_select %p157_p1, %s1054_s23, %s159_s28  }
   0xb   : > { %p1140_p5 = por %p170_p2, %p169_p0  ;;  %p1144_p6 = por %p176_p4, %p175_p3 }
   0xc   : > { %p735_p7 = scmp.ge.s32.totalorder %s1058_s24, 1  ;;  %p183_p8 = scmp.lt.s32.totalorder %s1058_s24, 3 }
   0xd   : > { %s1319_s7 = scalar_select %p1140_p5, 1, 0 }
   0xe   : > { %s1320_s8 = scalar_select %p1144_p6, 1, 0 }
   0xf   : > { %p1316_p9 = scmp.eq.s32.totalorder %s1123_s25, 0  ;;  %p1151_p10 = pnand %p735_p7, %p183_p8 }
  0x10   : > { %s1060_s10 = smov [#allocation2]   ;;  %s1061_s13 = smov [#allocation5]  }
  0x11   : > { %s1321_s9 = scalar_select %p1151_p10, 1, 0 }
  0x12   : > { %s195_s11 = sshll.u32 %s1060_s10, 4  ;;  %p849_p11 = pneg %p1151_p10  ;;  %s196_s11 = int_to_ptr.vmem [resolvable:$true] %s195_s11 }
  0x13   : > { %s211_s14 = sshll.u32 %s1061_s13, 4  ;;  %s932_s17 = scalar_lea.hbm %s1310_s1, 128  ;;  %s1163_s14 = int_to_ptr.vmem [resolvable:$true] %s211_s14 }
  0x14   : > { %p1159_p12 = pnand %p1316_p9, %p849_p11  ;;  %p933_p13 = scmp.ne.s32.totalorder %s1310_s1, %s932_s17 }
  0x15   : > { %p939_p3 = scmp.lt.u32.totalorder %s932_s17, %s1310_s1 }
  0x16   : > { %p934_p0 = pneg %p1159_p12 }
  0x18   : > { %p935_p1 = pnand %p934_p0, %p933_p13 }
  0x1a   : > { %p936_p2 = pneg %p935_p1 }
  0x1c   : > { %p941_p4 = pnand %p939_p3, %p936_p2 }
  0x1e   : > { %944 = shalt.err (!%p941_p4)
}
  0x1f   : > { %s945_s28 = scalar_lea.vmem %s196_s11, 128  ;;  %p953_p9 = scmp.lt.s32.totalorder %s196_s11, %s196_s11 }
  0x20   : > { %p946_p7 = scmp.ne.s32.totalorder %s196_s11, %s945_s28  ;;  %p954_p6 = scmp.lt.s32.totalorder %s945_s28, %s945_s28 }
  0x22   : > { %p948_p8 = pnand %p946_p7, %p934_p0  ;;  %p955_p5 = por %p954_p6, %p953_p9 }
  0x24   : > { %p949_p11 = pneg %p948_p8 }
  0x26   : > { %p956_p10 = pnand %p955_p5, %p949_p11 }
  0x28   : > { %959 = shalt.err (!%p956_p10)
}
  0x29   : > { %s1062_s29 = smov 64   ;;  %s1063_s10 = smov 4  }
  0x2a   : > { %852 = dma.hbm_to_vmem [thread:$0]  (!%p1159_p12), %s1310_s1, 128, %s196_s11, [#allocation3], %s1062_s29, %s1062_s29, %s1063_s10  }
  0x2b   : > { %s960_s18 = scalar_lea.hbm %s1312_s3, 1024 }
  0x2c   : > { %p961_p13 = scmp.ne.s32.totalorder %s1312_s3, %s960_s18  ;;  %p967_p9 = scmp.lt.u32.totalorder %s960_s18, %s1312_s3 }
  0x2e   : > { %p963_p5 = pnand %p961_p13, %p934_p0 }
  0x30   : > { %p964_p6 = pneg %p963_p5 }
  0x32   : > { %p969_p10 = pnand %p967_p9, %p964_p6 }
  0x34   : > { %972 = shalt.err (!%p969_p10)
}
  0x35   : > { %s973_s11 = scalar_lea.vmem %s1163_s14, 1024  ;;  %p981_p4 = scmp.lt.s32.totalorder %s1163_s14, %s1163_s14 }
  0x36   : > { %p974_p1 = scmp.ne.s32.totalorder %s1163_s14, %s973_s11  ;;  %p982_p7 = scmp.lt.s32.totalorder %s973_s11, %s973_s11 }
  0x38   : > { %p976_p2 = pnand %p974_p1, %p934_p0  ;;  %p983_p8 = por %p982_p7, %p981_p4 }
  0x3a   : > { %p977_p3 = pneg %p976_p2 }
  0x3c   : > { %p984_p11 = pnand %p983_p8, %p977_p3 }
  0x3e   : > { %987 = shalt.err (!%p984_p11)
}
  0x3f   : > { %855 = dma.hbm_to_vmem [thread:$0]  (!%p1159_p12), %s1312_s3, 1024, %s1163_s14, [#allocation6], %s1062_s29, %s1062_s29, %s1063_s10  }
  0x40   : > { %p1323_p13 = scmp.ne.s32.totalorder %s1321_s9, 0 }
  0x41   : > { %p1324_p5 = scmp.eq.s32.totalorder (!%p1323_p13), %s1123_s25, 0 }
  0x42   : > { %242 = sbr.rel (%p1323_p13) target bundleno = 1082 (0x43a), region = 44 }
  0x49   : > { %1033 = dma.done.wait (%p1324_p5), [#allocation3], 128   ;;  %p1325_p0 = pmov %p1324_p5 }
  0x4b   : > { %1035 = vsyncadd (%p1325_p0), [#allocation3], 4294967168  ;;  %p1326_p6 = pmov %p1325_p0 }
  0x4c   : > { %p1327_p9 = pmov %p1325_p0 }
  0x4d   : > { %1037 = dma.done.wait (%p1326_p6), [#allocation6], 1024  }
  0x4e   : > { %1039 = vsyncadd (%p1327_p9), [#allocation6], 4294966272  ;;  %s276_s12 = smul.u32 3, %s1123_s25  ;;  %v903_v0 = vld [vmem:[#allocation2] sm:$0xff]   ;;  %vm302_vm0 = vcmask 130048   ;;  %v905_v7 = vld [vmem:[%s1311_s2 + $0x8] sm:$0xff]  }
  0x4f   : > { %792 = vmatprep.subr.bf16.mxu0 %v903_v0  ;;  %v904_v6 = vld [vmem:[%s1311_s2] sm:$0xff]   ;;  %v906_v8 = vld [vmem:[%s1311_s2 + $0x10] sm:$0xff]   ;;  %v907_v9 = vld [vmem:[%s1311_s2 + $0x18] sm:$0xff]   ;;  %s273_s11 = sand.u32 1, %s1050_s22   ;;  %s768_s15 = smul.u32 384, %s1123_s25 }
  0x50   : > { %p277_p10 = scmp.lt.s32.totalorder %s276_s12, 5  ;;  %793 = vmatpush3.bf16.msra.mxu0 %v903_v0  ;;  %798 = vmatprep.subr.bf16.mxu1 %v904_v6  ;;  %v908_v10 = vld [vmem:[%s1311_s2 + $0x20] sm:$0xff]   ;;  %v909_v11 = vld [vmem:[%s1311_s2 + $0x28] sm:$0xff]   ;;  %v910_v12 = vld [vmem:[%s1311_s2 + $0x30] sm:$0xff]   ;;  %s838_s13 = smul.u32 24, %s273_s11 }
  0x51   : > { %799 = vmatpush3.bf16.msra.mxu1 %v904_v6  ;;  %v911_v13 = vld [vmem:[%s1311_s2 + $0x38] sm:$0xff]   ;;  %v912_v14 = vld [vmem:[#allocation5] sm:$0xff]   ;;  %v913_v15 = vld [vmem:[#allocation5 + $0x8] sm:$0xff]   ;;  %s1268_s25 = scalar_lea.sflag [#allocation4], %s273_s11  ;;  %p1328_p1 = scmp.ne.s32.totalorder %s1319_s7, 0 }
  0x52   : > { %s1335_s12 = smov (!%p277_p10, %s276_s12), 5  ;;  %800 = vmatprep.subr.bf16.mxu1 %v905_v7  ;;  %818 = vmatprep.subr.bf16.mxu0 %v912_v14  ;;  %v914_v16 = vld [vmem:[#allocation5 + $0x10] sm:$0xff]   ;;  %v915_v17 = vld [vmem:[#allocation5 + $0x18] sm:$0xff]   ;;  %v916_v18 = vld [vmem:[#allocation5 + $0x20] sm:$0xff]   ;;  %s1064_s17 = smov [#allocation7]  }
  0x53   : > { %s742_s14 = sshll.u32 %s1335_s12, 3  ;;  %v917_v19 = vld [vmem:[#allocation5 + $0x28] sm:$0xff]   ;;  %v743_v20 = vld [vmem:[%s1313_s4] ss:$0 sm:$0xff]  ;;  %v918_v33 = vld [vmem:[#allocation5 + $0x30] sm:$0xff]   ;;  %s275_s12 = scalar_lea.vmem [#allocation7], %s838_s13 }
  0x54   : > { %s280_s10 = scalar_lea.vmem %s1309_s0, %s742_s14  ;;  %v919_v34 = vld [vmem:[#allocation5 + $0x38] sm:$0xff]   ;;  %s650_s14 = sshll.u32 %s275_s12, 4  ;;  %s1261_s14 = int_to_ptr.vmem [resolvable:$true] %s650_s14 }
  0x55   : > { %v284_v1 = vld [vmem:[%s280_s10] sm:$0xff]  ;;  %v285_v2 = vld [vmem:[%s280_s10 + $0x8] sm:$0xff]  ;;  %v286_v3 = vld [vmem:[%s280_s10 + $0x10] sm:$0xff]  ;;  %801 = vmatpush3.bf16.msra.mxu1 %v905_v7  ;;  %s1266_s10 = scalar_lea.hbm %s1315_s6, %s768_s15  ;;  %s988_s16 = scalar_lea.vmem %s1261_s14, 384 }
  0x56   : > { %v287_v4 = vpack.c.bf16 %v285_v2, %v284_v1  ;;  %v288_v5 = vpack.c.bf16 %v286_v3, %v286_v3  ;;  %802 = vmatprep.subr.bf16.mxu1 %v906_v8  ;;  %v747_v35 = vld [vmem:[%s1313_s4 + $0x1] ss:$0 sm:$0xff]  ;;  %v756_v48 = vld [vmem:[%s1314_s5] ss:$0 sm:$0xff]  ;;  %p989_p12 = scmp.ne.s32.totalorder %s1261_s14, %s988_s16  ;;  %s992_s18 = sshll.u32 %s1064_s17, 4  ;;  %s993_s18 = int_to_ptr.vmem [resolvable:$false] %s992_s18 }
  0x57   : > { %s994_s19 = scalar_lea.vmem %s993_s18, 768  ;;  %p995_p4 = scmp.lt.s32.totalorder %s1261_s14, %s993_s18 }
  0x58   : > { %794 = vmatprep.mubr.msk.bf16.mxu0 %vm302_vm0, %v287_v4  ;;  %p990_p2 = pnand %p989_p12, %p1328_p1  ;;  %p996_p7 = scmp.lt.s32.totalorder %s994_s19, %s988_s16 }
  0x59   : > { %795 = vmatmul.mubr.msk.bf16.vlgmr.msra.gmra.mrb[0].mxu0 %vm302_vm0, %v288_v5  ;;  %803 = vmatpush3.bf16.msra.mxu1 %v906_v8 }
  0x5a   : > { %804 = vmatprep.subr.bf16.mxu1 %v907_v9  ;;  %819 = vmatpush3.bf16.msra.mxu0 %v912_v14  ;;  %p991_p3 = pneg %p990_p2  ;;  %p997_p8 = por %p996_p7, %p995_p4 }
  0x5b   : > { %820 = vmatprep.subr.bf16.mxu0 %v913_v15 }
  0x5c   : > { %p998_p11 = pnand %p997_p8, %p991_p3 }
  0x5d   : > { %805 = vmatpush3.bf16.msra.mxu1 %v907_v9 }
  0x5e   : > { %806 = vmatprep.subr.bf16.mxu1 %v908_v10  ;;  %821 = vmatpush3.bf16.msra.mxu0 %v913_v15 }
  0x5f   : > { %822 = vmatprep.subr.bf16.mxu0 %v914_v16 }
  0x61   : > { %807 = vmatpush3.bf16.msra.mxu1 %v908_v10 }
  0x62   : > { %808 = vmatprep.subr.bf16.mxu1 %v909_v11  ;;  %823 = vmatpush3.bf16.msra.mxu0 %v914_v16 }
  0x63   : > { %824 = vmatprep.subr.bf16.mxu0 %v915_v17 }
  0x65   : > { %809 = vmatpush3.bf16.msra.mxu1 %v909_v11 }
  0x66   : > { %810 = vmatprep.subr.bf16.mxu1 %v910_v12  ;;  %825 = vmatpush3.bf16.msra.mxu0 %v915_v17 }
  0x67   : > { %826 = vmatprep.subr.bf16.mxu0 %v916_v18 }
  0x69   : > { %811 = vmatpush3.bf16.msra.mxu1 %v910_v12 }
  0x6a   : > { %812 = vmatprep.subr.bf16.mxu1 %v911_v13  ;;  %827 = vmatpush3.bf16.msra.mxu0 %v916_v18 }
  0x6b   : > { %828 = vmatprep.subr.bf16.mxu0 %v917_v19 }
  0x6d   : > { %813 = vmatpush3.bf16.msra.mxu1 %v911_v13 }
  0x6e   : > { %829 = vmatpush3.bf16.msra.mxu0 %v917_v19 }
  0x6f   : > { %830 = vmatprep.subr.bf16.mxu0 %v918_v33 }
  0x72   : > { %831 = vmatpush3.bf16.msra.mxu0 %v918_v33 }
  0x73   : > { %832 = vmatprep.subr.bf16.mxu0 %v919_v34 }
  0x76   : > { %833 = vmatpush3.bf16.msra.mxu0 %v919_v34 }
 0x12c   : > { %v796_v21 = vpop.f32.mrb[0].mxu0 }
 0x12d   : > { %v352_v22 = vadd.f32 %v796_v21, %v743_v20  ;;  %v343_v23 = vpop.f32.mrb[1].mxu0 }
 0x12e   : > { %v344_v24 = vadd.f32 %v743_v20, %v343_v23  ;;  %v797_v25 = vpop.f32.mrb[2].mxu0 }
 0x12f   : > { %v346_v26 = vpop.f32.mrb[3].mxu0  ;;  %v359_v28 = vmax.f32 %v352_v22, 0.0 }
 0x130   : > { %v347_v27 = vadd.f32 %v743_v20, %v346_v26  ;;  %v357_v29 = vmax.f32 %v344_v24, 0.0 }
 0x131   : > { %v361_v32 = vpack.c.bf16 %v359_v28, %v359_v28 }
 0x132   : > { %v358_v30 = vmax.f32 %v347_v27, 0.0 }
 0x134   : > { %v360_v31 = vpack.c.bf16 %v358_v30, %v357_v29 }
 0x136   : > { %814 = vmatprep.mubr.bf16.mxu1 %v360_v31 }
 0x137   : > { %815 = vmatmul.mubr.bf16.vlgmr.msra.gmra.mrb[0].mxu1 %v361_v32 }
 0x20a   : > { %v816_v36 = vpop.f32.mrb[0].mxu1 }
 0x20b   : > { %v474_v37 = vadd.f32 %v816_v36, %v747_v35  ;;  %v465_v38 = vpop.f32.mrb[1].mxu1 }
 0x20c   : > { %v466_v39 = vadd.f32 %v747_v35, %v465_v38  ;;  %v817_v40 = vpop.f32.mrb[2].mxu1 }
 0x20d   : > { %v468_v41 = vpop.f32.mrb[3].mxu1  ;;  %v481_v43 = vmax.f32 %v474_v37, 0.0 }
 0x20e   : > { %v469_v42 = vadd.f32 %v747_v35, %v468_v41  ;;  %v479_v44 = vmax.f32 %v466_v39, 0.0 }
 0x20f   : > { %v483_v47 = vpack.c.bf16 %v481_v43, %v481_v43 }
 0x210   : > { %v480_v45 = vmax.f32 %v469_v42, 0.0 }
 0x212   : > { %v482_v46 = vpack.c.bf16 %v480_v45, %v479_v44 }
 0x214   : > { %834 = vmatprep.mubr.bf16.mxu0 %v482_v46 }
 0x215   : > { %835 = vmatmul.mubr.bf16.vlgmr.msra.gmra.mrb[4].mxu0 %v483_v47 }
 0x2e8   : > { %v836_v49 = vpop.f32.mrb[4].mxu0 }
 0x2e9   : > { %v598_v50 = vadd.f32 %v836_v49, %v756_v48  ;;  %v589_v51 = vpop.f32.mrb[5].mxu0 }
 0x2ea   : > { %v590_v52 = vadd.f32 %v756_v48, %v589_v51  ;;  %v837_v53 = vpop.f32.mrb[6].mxu0 }
 0x2eb   : > { %607 = vmax.xlane.f32.xlu1 %v598_v50  ;;  %v592_v54 = vpop.f32.mrb[7].mxu0 }
 0x2ec   : > { %603 = vmax.xlane.f32.xlu0 %v590_v52  ;;  %v593_v55 = vadd.f32 %v756_v48, %v592_v54 }
 0x2f0   : > { %605 = vmax.xlane.f32.xlu0 %v593_v55 }
 0x378   : > { %v608_v56 = vpop.xlane.xlu1 %607 }
 0x379   : > { %v611_v57 = vsub.f32 %v598_v50, %v608_v56  ;;  %v604_v58 = vpop.xlane.xlu0 %603 }
 0x37a   : > { %v609_v59 = vsub.f32 %v590_v52, %v604_v58 }
 0x37b   : > { %v616_v61 = vmul.f32 1.442695, %v611_v57 }
 0x37c   : > { %v612_v60 = vmul.f32 1.442695, %v609_v59 }
 0x37d   : > { %v606_v62 = vpop.xlane.xlu0 %605 }
 0x37e   : > { %920 = vpow2.f32 %v612_v60  ;;  %v610_v63 = vsub.f32 %v593_v55, %v606_v62 }
 0x37f   : > { %922 = vpow2.f32 %v616_v61 }
 0x380   : > { %v614_v0 = vmul.f32 1.442695, %v610_v63 }
 0x382   : > { %924 = vpow2.f32 %v614_v0 }
 0x388   : > { %v921_v1 = vpop.eup %920 }
 0x389   : > { %618 = vadd.xlane.f32.xlu1 %v921_v1  ;;  %v923_v2 = vpop.eup %922 }
 0x38c   : > { %v925_v3 = vpop.eup %924 }
 0x38d   : > { %622 = vadd.xlane.f32.xlu1 %v923_v2  ;;  %620 = vadd.xlane.f32.xlu0 %v925_v3 }
 0x416   : > { %v619_v4 = vpop.xlane.xlu1 %618 }
 0x417   : > { %926 = vlog2.f32 %v619_v4 }
 0x41a   : > { %v623_v5 = vpop.xlane.xlu1 %622  ;;  %v621_v6 = vpop.xlane.xlu0 %620 }
 0x41b   : > { %928 = vlog2.f32 %v623_v5 }
 0x41c   : > { %930 = vlog2.f32 %v621_v6 }
 0x421   : > { %v927_v7 = vpop.eup %926 }
 0x422   : > { %v625_v8 = vmul.f32 0.6931472, %v927_v7 }
 0x424   : > { %v630_v9 = vsub.f32 %v609_v59, %v625_v8 }
 0x425   : > { %v929_v10 = vpop.eup %928 }
 0x426   : > { %v931_v11 = vpop.eup %930  ;;  %633 = vst [vmem:[%s275_s12] sm:$0xff] %v630_v9  ;;  %v629_v12 = vmul.f32 0.6931472, %v929_v10 }
 0x427   : > { %v627_v13 = vmul.f32 0.6931472, %v931_v11 }
 0x428   : > { %v632_v14 = vsub.f32 %v611_v57, %v629_v12 }
 0x429   : > { %v631_v15 = vsub.f32 %v610_v63, %v627_v13 }
 0x42a   : > { %635 = vst [vmem:[%s275_s12 + $0x10] sm:$0xff] %v632_v14 }
 0x42b   : > { %634 = vst [vmem:[%s275_s12 + $0x8] sm:$0xff] %v631_v15 }
 0x42c   : > { %1001 = shalt.err (!%p998_p11)
}
 0x42d   : > { %s1002_s20 = scalar_lea.hbm %s1266_s10, 384  ;;  %s1006_s11 = scalar_lea.hbm %s1315_s6, 768 }
 0x42e   : > { %p1003_p13 = scmp.ne.s32.totalorder %s1266_s10, %s1002_s20  ;;  %p1007_p6 = scmp.lt.u32.totalorder %s1266_s10, %s1315_s6 }
 0x42f   : > { %p1008_p9 = scmp.lt.u32.totalorder %s1006_s11, %s1002_s20  ;;  %p1010_p12 = scmp.lt.u32.totalorder %s1002_s20, %s1266_s10 }
 0x430   : > { %p1004_p5 = pnand %p1003_p13, %p1328_p1 }
 0x431   : > { %p1009_p10 = por %p1008_p9, %p1007_p6 }
 0x432   : > { %p1005_p0 = pneg %p1004_p5 }
 0x433   : > { %p1011_p2 = por %p1010_p12, %p1009_p10 }
 0x435   : > { %p1012_p3 = pnand %p1011_p2, %p1005_p0 }
 0x437   : > { %1015 = shalt.err (!%p1012_p3)
}
 0x438   : > { %s1065_s12 = smov 128   ;;  %s1066_s9 = smov 8  }
 0x439   : > { %847 = dma.vmem_to_hbm [thread:$0]  (%p1328_p1), %s1261_s14, 384, %s1266_s10, %s1268_s25, %s1065_s12, %s1065_s12, %s1066_s9  }
 0x43a PF: > { %p864_p4 = scmp.ge.s32.totalorder %s1058_s24, 2  ;;  %s665_s29 = sand.u32 1, %s1046_s21  }
 0x43b   : > { %p1329_p7 = scmp.ne.s32.totalorder %s1320_s8, 0  ;;  %s666_s16 = scalar_lea.sflag [#allocation4], %s665_s29 }
 0x43d   : > { %p857_p8 = pnand %p864_p4, %p1329_p7 }
 0x43f   : > { %1041 = dma.done.wait (!%p857_p8), %s666_s16, 384  }
 0x440   : > { %1043 = vsyncadd (!%p857_p8), %s666_s16, 4294966912  ;;  %p18_p11 = scmp.ge.s32.totalorder %s1127_s27, 4   ;;  %s1330_s21 = smov %s1050_s22 }
 0x441   : > { %s1331_s22 = smov %s1054_s23  ;;  %s1332_s23 = smov %s1138_s30 }
 0x442   : > { %s1333_s24 = smov %s1127_s27  ;;  %20 = sbr.rel (!%p18_p11) target bundleno = 5 (0x5), region = 88 }
 0x449   :  { %671 = vsyncpa [#allocation3], 1 }
 0x44a   :  { %673 = vsyncpa [#allocation3 + $0x1], 1 }
 0x44b   :  { %674 = vsyncpa [#allocation6], 1 }
 0x44c   :  { %675 = vsyncpa [#allocation4], 1 }
 0x44d   :  { %677 = vsyncpa [#allocation4 + $0x1], 1 }

</bundles_post_ra>
